<compile_context>
chip_gen: v6e
topology: v6e:2x2x1
jax: 0.10.0
libtpu: 0.0.40
codegen_flags: <defaults>
</compile_context>

<pallas_src>
import functools

import jax
import jax.numpy as jnp
from jax import lax
from jax.experimental import pallas as pl
from jax.experimental.pallas import tpu as pltpu

VMEM_LIMIT = 48 * 1024 * 1024  # safe on v5e/v6e (128 MiB) and v7x (64 MiB)


# ----------------------------------------------------------------------------
# small helpers
# ----------------------------------------------------------------------------
def _round_up(x, m):
    return ((x + m - 1) // m) * m


def _tile_and_pad(dim, max_tile, mult):
    """Pick a tile (multiple of `mult`, <= ~max_tile) and a padded dim it divides."""
    padded = _round_up(dim, mult)
    tile = min(_round_up(max_tile, mult), padded)
    padded = _round_up(padded, tile)
    return tile, padded


# ----------------------------------------------------------------------------
# Tiled fused matmul: O = act(A @ B + bias)      (bf16 MXU, f32 accumulator)
# ----------------------------------------------------------------------------
def _mm_kernel(a_ref, b_ref, bias_ref, o_ref, acc_ref, *, act):
    @pl.when(pl.program_id(2) == 0)
    def _():
        acc_ref[...] = jnp.zeros_like(acc_ref)

    acc_ref[...] += jnp.dot(a_ref[...], b_ref[...],
                            preferred_element_type=jnp.float32)

    @pl.when(pl.program_id(2) == pl.num_programs(2) - 1)
    def _():
        out = acc_ref[...] + bias_ref[...]          # (1, tn) broadcasts
        if act == "relu":
            out = jnp.maximum(out, 0.0)
        o_ref[...] = out.astype(o_ref.dtype)


def matmul_bias_act(a, b, bias, act="none", out_dtype=jnp.float32,
                    tm=512, tn=256, tk=512):
    """A:(M,K) @ B:(K,N) + bias:(N,) with optional ReLU, tiled on the MXU."""
    M, K = a.shape
    K2, N = b.shape
    assert K == K2
    tm_, Mp = _tile_and_pad(M, tm, 8)
    tn_, Np = _tile_and_pad(N, tn, 128)
    tk_, Kp = _tile_and_pad(K, tk, 128)

    a_p = jnp.pad(a.astype(jnp.bfloat16), ((0, Mp - M), (0, Kp - K)))
    b_p = jnp.pad(b.astype(jnp.bfloat16), ((0, Kp - K), (0, Np - N)))
    bias_p = jnp.pad(bias.astype(jnp.float32), (0, Np - N)).reshape(1, Np)

    out = pl.pallas_call(
        functools.partial(_mm_kernel, act=act),
        out_shape=jax.ShapeDtypeStruct((Mp, Np), out_dtype),
        grid=(Mp // tm_, Np // tn_, Kp // tk_),
        in_specs=[
            pl.BlockSpec((tm_, tk_), lambda i, j, k: (i, k)),
            pl.BlockSpec((tk_, tn_), lambda i, j, k: (k, j)),
            pl.BlockSpec((1, tn_), lambda i, j, k: (0, j)),
        ],
        out_specs=pl.BlockSpec((tm_, tn_), lambda i, j, k: (i, j)),
        scratch_shapes=[pltpu.VMEM((tm_, tn_), jnp.float32)],
        compiler_params=pltpu.CompilerParams(
            dimension_semantics=("parallel", "parallel", "arbitrary"),
            vmem_limit_bytes=VMEM_LIMIT),
    )(a_p, b_p, bias_p)
    return out[:M, :N]


# ----------------------------------------------------------------------------
# LiftSplat "lift" kernel: softmax over depth bins, outer-product with the
# context feature, stored lane-dense as (Q, D*C) bf16.
# ----------------------------------------------------------------------------
def _lift_kernel(dlogit_ref, feat_ref, o_ref, *, D):
    d = dlogit_ref[...].astype(jnp.float32)                 # (tQ, D)
    d = d - jnp.max(d, axis=-1, keepdims=True)
    e = jnp.exp(d)
    p = e * pl.reciprocal(jnp.sum(e, axis=-1, keepdims=True), approx=True)
    f = feat_ref[...].astype(jnp.float32)                   # (tQ, C)
    parts = [p[:, dd:dd + 1] * f for dd in range(D)]        # D x (tQ, C)
    o_ref[...] = jnp.concatenate(parts, axis=-1).astype(o_ref.dtype)


def lift_depth_feature(dlogits, ctx, *, tq=256):
    Q, D = dlogits.shape
    C = ctx.shape[1]
    tq_, Qp = _tile_and_pad(Q, tq, 8)
    dl = jnp.pad(dlogits.astype(jnp.float32), ((0, Qp - Q), (0, 0)))
    cx = jnp.pad(ctx.astype(jnp.float32), ((0, Qp - Q), (0, 0)))
    out = pl.pallas_call(
        functools.partial(_lift_kernel, D=D),
        out_shape=jax.ShapeDtypeStruct((Qp, D * C), jnp.bfloat16),
        grid=(Qp // tq_,),
        in_specs=[
            pl.BlockSpec((tq_, D), lambda i: (i, 0)),
            pl.BlockSpec((tq_, C), lambda i: (i, 0)),
        ],
        out_specs=pl.BlockSpec((tq_, D * C), lambda i: (i, 0)),
        compiler_params=pltpu.CompilerParams(
            dimension_semantics=("parallel",),
            vmem_limit_bytes=VMEM_LIMIT),
    )(dl, cx)
    return out[:Q]                                           # (Q, D*C) bf16


# ----------------------------------------------------------------------------
# Voxel splat: sum features of all frustum points falling into each BEV cell.
# One pallas_call, grid (B, V_tiles, P_tiles); the one-hot is built in-VMEM
# from the int32 voxel indices (no O(V*P) HBM tensor) and fed to the MXU.
# ----------------------------------------------------------------------------
def _splat_kernel(vox_ref, vol_ref, o_ref, acc_ref, *, tV):
    @pl.when(pl.program_id(2) == 0)
    def _():
        acc_ref[...] = jnp.zeros_like(acc_ref)

    v_ids = pl.program_id(1) * tV + lax.broadcasted_iota(jnp.int32, (tV, 1), 0)
    onehot = (v_ids == vox_ref[0]).astype(jnp.bfloat16)      # (tV, tP)
    acc_ref[...] += jnp.dot(onehot, vol_ref[0],
                            preferred_element_type=jnp.float32)

    @pl.when(pl.program_id(2) == pl.num_programs(2) - 1)
    def _():
        o_ref[...] = acc_ref[...][None].astype(o_ref.dtype)


def voxel_splat(vox, vol, V, *, tv=128, tp=512):
    """vox:(B,P) int32 voxel ids (-1 = invalid), vol:(B,P,C) bf16 -> (B,V,C)."""
    B, P = vox.shape
    C = vol.shape[-1]
    tp_, Pp = _tile_and_pad(P, tp, 128)
    Vp = _round_up(V, tv)

    vox_p = jnp.pad(vox.astype(jnp.int32), ((0, 0), (0, Pp - P)),
                    constant_values=-1).reshape(B, 1, Pp)
    vol_p = jnp.pad(vol.astype(jnp.bfloat16), ((0, 0), (0, Pp - P), (0, 0)))

    out = pl.pallas_call(
        functools.partial(_splat_kernel, tV=tv),
        out_shape=jax.ShapeDtypeStruct((B, Vp, C), jnp.bfloat16),
        grid=(B, Vp // tv, Pp // tp_),
        in_specs=[
            pl.BlockSpec((1, 1, tp_), lambda b, vi, pj: (b, 0, pj)),
            pl.BlockSpec((1, tp_, C), lambda b, vi, pj: (b, pj, 0)),
        ],
        out_specs=pl.BlockSpec((1, tv, C), lambda b, vi, pj: (b, vi, 0)),
        scratch_shapes=[pltpu.VMEM((tv, C), jnp.float32)],
        compiler_params=pltpu.CompilerParams(
            dimension_semantics=("parallel", "parallel", "arbitrary"),
            vmem_limit_bytes=VMEM_LIMIT),
    )(vox_p, vol_p)
    return out[:, :V, :]


# ----------------------------------------------------------------------------
# Conv helpers (im2col glue; heavy matmul streams through the tiled kernel)
# TODO(synk): a fully in-kernel shifted-window K-reduction would remove the
#             im2col HBM expansion; here the patch matrix is at least streamed
#             tile-by-tile instead of held whole-block resident.
# ----------------------------------------------------------------------------
def _im2col(x, k, stride, pad):
    B, H, W, C = x.shape
    xp = jnp.pad(x, ((0, 0), (pad, pad), (pad, pad), (0, 0)))
    Ho = (H + 2 * pad - k) // stride + 1
    Wo = (W + 2 * pad - k) // stride + 1
    cols = []
    for dy in range(k):
        for dx in range(k):
            cols.append(xp[:, dy:dy + stride * Ho:stride,
                           dx:dx + stride * Wo:stride, :])
    patches = jnp.concatenate(cols, axis=-1)              # (B, Ho, Wo, k*k*C)
    return patches.reshape(B * Ho * Wo, k * k * C), (B, Ho, Wo)


def conv2d(x, w, b, stride=1, act="relu", out_dtype=jnp.bfloat16):
    k = w.shape[0]
    cols, (B, Ho, Wo) = _im2col(x, k, stride, k // 2)
    wm = w.reshape(-1, w.shape[-1])
    out = matmul_bias_act(cols, wm, b, act=act, out_dtype=out_dtype)
    return out.reshape(B, Ho, Wo, -1)


def conv1x1(x, w, b, act="none", out_dtype=jnp.bfloat16):
    B, H, W, C = x.shape
    out = matmul_bias_act(x.reshape(B * H * W, C), w, b, act=act,
                          out_dtype=out_dtype)
    return out.reshape(B, H, W, -1)


# ----------------------------------------------------------------------------
# LiftSplat geometry (plain JAX glue: tiny 3x3 linear algebra)
# ----------------------------------------------------------------------------
def create_frustum(image_size, downsample, dbound):
    H, W = image_size
    fH, fW = H // downsample, W // downsample
    ds = jnp.arange(dbound[0], dbound[1], dbound[2], dtype=jnp.float32)
    D = ds.shape[0]
    xs = jnp.linspace(0.0, W - 1.0, fW, dtype=jnp.float32)
    ys = jnp.linspace(0.0, H - 1.0, fH, dtype=jnp.float32)
    d_g = jnp.broadcast_to(ds[:, None, None], (D, fH, fW))
    x_g = jnp.broadcast_to(xs[None, None, :], (D, fH, fW))
    y_g = jnp.broadcast_to(ys[None, :, None], (D, fH, fW))
    return jnp.stack([x_g, y_g, d_g], axis=-1)            # (D, fH, fW, 3)


def get_geometry(frustum, rots, trans, intrins):
    B, N = rots.shape[:2]
    D, fH, fW, _ = frustum.shape
    pts = jnp.broadcast_to(frustum[None, None], (B, N, D, fH, fW, 3))
    pts = jnp.concatenate([pts[..., :2] * pts[..., 2:3], pts[..., 2:3]], axis=-1)
    combine = rots @ jnp.linalg.inv(intrins)              # (B, N, 3, 3)
    pts = jnp.einsum("bnij,bndhwj->bndhwi", combine, pts)
    pts = pts + trans[:, :, None, None, None, :]
    return pts                                            # (B, N, D, fH, fW, 3)


def voxel_indices(geom_flat, grid_conf):
    """geom_flat: (B, P, 3) -> (B, P) int32 BEV cell ids (-1 = out of range)."""
    xb, yb, zb = grid_conf["xbound"], grid_conf["ybound"], grid_conf["zbound"]
    nx = int(round((xb[1] - xb[0]) / xb[2]))
    ny = int(round((yb[1] - yb[0]) / yb[2]))
    nz = int(round((zb[1] - zb[0]) / zb[2]))
    lower = jnp.array([xb[0], yb[0], zb[0]], jnp.float32)
    dx = jnp.array([xb[2], yb[2], zb[2]], jnp.float32)
    coords = jnp.floor((geom_flat - lower) / dx).astype(jnp.int32)
    valid = ((coords[..., 0] >= 0) & (coords[..., 0] < nx) &
             (coords[..., 1] >= 0) & (coords[..., 1] < ny) &
             (coords[..., 2] >= 0) & (coords[..., 2] < nz))
    # TODO(synk): z is collapsed into one BEV plane (exact only for nz == 1,
    #             which the provided grid_conf satisfies).
    vox = jnp.where(valid, coords[..., 0] * ny + coords[..., 1], -1)
    return vox.astype(jnp.int32), nx, ny


# ----------------------------------------------------------------------------
# Parameter init (deterministic, synthetic)
# ----------------------------------------------------------------------------
def _conv_init(key, k, cin, cout):
    w = jax.random.normal(key, (k, k, cin, cout), jnp.float32) / jnp.sqrt(k * k * cin)
    return w, jnp.zeros((cout,), jnp.float32)


def _lin_init(key, cin, cout):
    w = jax.random.normal(key, (cin, cout), jnp.float32) / jnp.sqrt(cin)
    return w, jnp.zeros((cout,), jnp.float32)


def init_params(key, num_seg_classes, depth_bins):
    ks = jax.random.split(key, 9)
    return {
        # image encoder (+FPN) -> 64ch @ /8
        "img1": _conv_init(ks[0], 3, 3, 16),
        "img2": _conv_init(ks[1], 3, 16, 32),
        "img3": _conv_init(ks[2], 3, 32, 64),
        # LiftSplat depthnet: 1x1 conv 64 -> D + 64
        "depthnet": _lin_init(ks[3], 64, depth_bins + 64),
        # BEV encoder
        "bev1": _conv_init(ks[4], 3, 64, 64),
        "bev2": _conv_init(ks[5], 3, 64, 64),
        # BEV FPN fuse (1x1 on concat[bev_image, bev_feature])
        "bevfpn": _lin_init(ks[6], 128, 64),
        # seg head: 3x3 + relu, then 1x1 -> classes
        "seg1": _conv_init(ks[7], 3, 64, 64),
        "seg2": _lin_init(ks[8], 64, num_seg_classes),
    }


# ----------------------------------------------------------------------------
# BEVision forward
# ----------------------------------------------------------------------------
def bevision_forward(params, x, rots, trans, intrins, *,
                     grid_conf, image_size, num_cameras, downsample=8):
    B, N, Cin, H, W = x.shape
    assert N == num_cameras
    xi = x.reshape(B * N, Cin, H, W).transpose(0, 2, 3, 1)        # NHWC

    # --- image encoder + image FPN (simplified) -> (B*N, H/8, W/8, 64) ------
    f = conv2d(xi, *params["img1"], stride=2, act="relu")
    f = conv2d(f, *params["img2"], stride=2, act="relu")
    f = conv2d(f, *params["img3"], stride=2, act="relu")
    fH, fW = f.shape[1], f.shape[2]
    C = f.shape[-1]

    # --- LiftSplat transformer ----------------------------------------------
    db = grid_conf["dbound"]
    D = int(round((db[1] - db[0]) / db[2]))
    flat = f.reshape(B * N * fH * fW, C)
    dn = matmul_bias_act(flat, *params["depthnet"], act="none",
                         out_dtype=jnp.float32)                   # (Q, D+64)
    dlogits, ctx = dn[:, :D], dn[:, D:D + C]
    vol = lift_depth_feature(dlogits, ctx)                        # (Q, D*C) bf16
    # pure reshape (no HBM transpose of the big lifted volume): rows are
    # (b, n, h, w) ordered, columns are depth-major -> (B, N*fH*fW*D, C)
    vol = vol.reshape(B, N * fH * fW * D, C)

    frustum = create_frustum(image_size, downsample, db)
    geom = get_geometry(frustum, rots, trans, intrins)            # (B,N,D,fH,fW,3)
    geom = jnp.transpose(geom, (0, 1, 3, 4, 2, 5))                # tiny tensor
    vox, nx, ny = voxel_indices(geom.reshape(B, -1, 3), grid_conf)
    bev = voxel_splat(vox, vol, nx * ny)                          # (B, nx*ny, C)
    bev_image = bev.reshape(B, nx, ny, C)

    # --- BEV encoder + BEV FPN (simplified) ----------------------------------
    b1 = conv2d(bev_image, *params["bev1"], stride=1, act="relu")
    b2 = conv2d(b1, *params["bev2"], stride=1, act="relu")
    fused = conv1x1(jnp.concatenate([bev_image, b2], axis=-1),
                    *params["bevfpn"], act="relu")

    # --- segmentation head ----------------------------------------------------
    s = conv2d(fused, *params["seg1"], stride=1, act="relu")
    seg = conv1x1(s, *params["seg2"], act="none", out_dtype=jnp.float32)
    return seg            # (B, nx, ny, num_seg_classes)  NHWC


# ----------------------------------------------------------------------------
if __name__ == "__main__":
    key = jax.random.PRNGKey(0)
    k_x, k_p = jax.random.split(key)

    B, NUM_CAMERAS, CIN, H, W = 2, 2, 3, 32, 32
    NUM_SEG_CLASSES = 4
    IMAGE_SIZE = (H, W)
    GRID_CONF = {
        "xbound": [-8.0, 8.0, 1.0],     # 16 BEV cells in x
        "ybound": [-8.0, 8.0, 1.0],     # 16 BEV cells in y
        "zbound": [-10.0, 10.0, 20.0],  # 1 cell in z (collapsed)
        "dbound": [1.0, 5.0, 1.0],      # 4 depth bins
    }
    D_BINS = int(round((GRID_CONF["dbound"][1] - GRID_CONF["dbound"][0])
                       / GRID_CONF["dbound"][2]))

    x = jax.random.normal(k_x, (B, NUM_CAMERAS, CIN, H, W), jnp.float32)
    rots = jnp.broadcast_to(jnp.eye(3, dtype=jnp.float32),
                            (B, NUM_CAMERAS, 3, 3))
    trans = jnp.broadcast_to(jnp.array([0.5, -0.5, 0.0], jnp.float32),
                             (B, NUM_CAMERAS, 3))
    intrins = jnp.broadcast_to(
        jnp.array([[8.0, 0.0, 16.0],
                   [0.0, 8.0, 16.0],
                   [0.0, 0.0, 1.0]], jnp.float32),
        (B, NUM_CAMERAS, 3, 3))

    params = init_params(k_p, NUM_SEG_CLASSES, D_BINS)

    seg = bevision_forward(params, x, rots, trans, intrins,
                           grid_conf=GRID_CONF, image_size=IMAGE_SIZE,
                           num_cameras=NUM_CAMERAS, downsample=8)
    seg = jax.block_until_ready(seg)
    assert seg.shape == (B, 16, 16, NUM_SEG_CLASSES)
    print("KERNEL_OK")
</pallas_src>

<mosaic_0001>
module attributes {stable_mosaic.version = 11 : i64} {
  func.func @_mm_kernel(%arg0: i32, %arg1: i32, %arg2: i32, %arg3: memref<512x128xbf16, #tpu.memory_space<vmem>>, %arg4: memref<128x128xbf16, #tpu.memory_space<vmem>>, %arg5: memref<1x128xf32, #tpu.memory_space<vmem>>, %arg6: memref<512x128xbf16, #tpu.memory_space<vmem>>, %arg7: memref<512x128xf32, #tpu.memory_space<vmem>>) attributes {dimension_semantics = [#tpu.dimension_semantics<parallel>, #tpu.dimension_semantics<parallel>, #tpu.dimension_semantics<arbitrary>], iteration_bounds = array<i64: 2, 1, 1>, scalar_prefetch = 0 : i64, scratch_operands = 1 : i64, tpu.core_type = #tpu.core_type<tc>, window_params = [{transform_indices = @transform_0, window_bounds = array<i64: 512, 128>}, {transform_indices = @transform_1, window_bounds = array<i64: 128, 128>}, {transform_indices = @transform_2, window_bounds = array<i64: 1, 128>}, {transform_indices = @transform_3, window_bounds = array<i64: 512, 128>}]} {
    %c0_i32 = arith.constant 0 : i32
    %0 = arith.cmpi eq, %arg2, %c0_i32 : i32
    %1 = arith.extui %0 : i1 to i32
    %c0_i32_0 = arith.constant 0 : i32
    %2 = arith.cmpi ne, %1, %c0_i32_0 : i32
    scf.if %2 {
      %cst_10 = arith.constant 0.000000e+00 : f32
      %12 = vector.broadcast %cst_10 : f32 to vector<512x128xf32>
      %c0_11 = arith.constant 0 : index
      %c0_12 = arith.constant 0 : index
      %13 = vector.load %arg7[%c0_11, %c0_12] : memref<512x128xf32, #tpu.memory_space<vmem>>, vector<512x128xf32>
      tpu.vector_store %arg7[%c0_11, %c0_12], %12 {strides = array<i32>} : memref<512x128xf32, #tpu.memory_space<vmem>>, vector<512x128xf32>,
    } else {
    }
    %c0 = arith.constant 0 : index
    %c0_1 = arith.constant 0 : index
    %3 = vector.load %arg7[%c0, %c0_1] : memref<512x128xf32, #tpu.memory_space<vmem>>, vector<512x128xf32>
    %c0_2 = arith.constant 0 : index
    %c0_3 = arith.constant 0 : index
    %4 = vector.load %arg3[%c0_2, %c0_3] : memref<512x128xbf16, #tpu.memory_space<vmem>>, vector<512x128xbf16>
    %c0_4 = arith.constant 0 : index
    %c0_5 = arith.constant 0 : index
    %5 = vector.load %arg4[%c0_4, %c0_5] : memref<128x128xbf16, #tpu.memory_space<vmem>>, vector<128x128xbf16>
    %cst = arith.constant dense<0.000000e+00> : vector<512x128xf32>
    %6 = tpu.matmul %4, %5, %cst {dimension_numbers = #tpu.dot_dimension_numbers<[1], [0], [0], [1], [0, 0, 1, 1], [], []>} : vector<512x128xbf16>, vector<128x128xbf16>, vector<512x128xf32> -> vector<512x128xf32>
    %7 = arith.addf %3, %6 : vector<512x128xf32>
    %c0_6 = arith.constant 0 : index
    %c0_7 = arith.constant 0 : index
    %8 = vector.load %arg7[%c0_6, %c0_7] : memref<512x128xf32, #tpu.memory_space<vmem>>, vector<512x128xf32>
    tpu.vector_store %arg7[%c0_6, %c0_7], %7 {strides = array<i32>} : memref<512x128xf32, #tpu.memory_space<vmem>>, vector<512x128xf32>,
    %c0_i32_8 = arith.constant 0 : i32
    %9 = arith.cmpi eq, %arg2, %c0_i32_8 : i32
    %10 = arith.extui %9 : i1 to i32
    %c0_i32_9 = arith.constant 0 : i32
    %11 = arith.cmpi ne, %10, %c0_i32_9 : i32
    scf.if %11 {
      %c0_10 = arith.constant 0 : index
      %c0_11 = arith.constant 0 : index
      %12 = vector.load %arg7[%c0_10, %c0_11] : memref<512x128xf32, #tpu.memory_space<vmem>>, vector<512x128xf32>
      %c0_12 = arith.constant 0 : index
      %c0_13 = arith.constant 0 : index
      %13 = vector.load %arg5[%c0_12, %c0_13] : memref<1x128xf32, #tpu.memory_space<vmem>>, vector<1x128xf32>
      %14 = vector.broadcast %13 : vector<1x128xf32> to vector<512x128xf32>
      %15 = arith.addf %12, %14 : vector<512x128xf32>
      %cst_14 = arith.constant 0.000000e+00 : f32
      %16 = vector.broadcast %cst_14 : f32 to vector<512x128xf32>
      %17 = arith.maximumf %15, %16 : vector<512x128xf32>
      %18 = arith.truncf %17 : vector<512x128xf32> to vector<512x128xbf16>
      %c0_15 = arith.constant 0 : index
      %c0_16 = arith.constant 0 : index
      %19 = vector.load %arg6[%c0_15, %c0_16] : memref<512x128xbf16, #tpu.memory_space<vmem>>, vector<512x128xbf16>
      tpu.vector_store %arg6[%c0_15, %c0_16], %18 {strides = array<i32>} : memref<512x128xbf16, #tpu.memory_space<vmem>>, vector<512x128xbf16>,
    } else {
    }
    return
  }
  func.func @transform_0(%arg0: i32, %arg1: i32, %arg2: i32) -> (i32, i32) {
    %c0_i32 = arith.constant 0 : i32
    return %arg0, %arg2 : i32, i32
  }
  func.func @transform_1(%arg0: i32, %arg1: i32, %arg2: i32) -> (i32, i32) {
    %c0_i32 = arith.constant 0 : i32
    return %arg2, %arg1 : i32, i32
  }
  func.func @transform_2(%arg0: i32, %arg1: i32, %arg2: i32) -> (i32, i32) {
    %c0_i32 = arith.constant 0 : i32
    %c0_i32_0 = arith.constant 0 : i32
    return %c0_i32, %arg1 : i32, i32
  }
  func.func @transform_3(%arg0: i32, %arg1: i32, %arg2: i32) -> (i32, i32) {
    %c0_i32 = arith.constant 0 : i32
    return %arg0, %arg1 : i32, i32
  }
}

</mosaic_0001>

<bundles_post_ra>
// kernel: tpu_custom_call.1
= control target key start
LH: loop header
LB: loop body
LE: loop exit
PB: predicated region body
PF: predicated region fallthrough
CT: control target
= control target key end

     0   :  { %8 = vsyncpa [#allocation4], 0  ;;  %s2906_s0 = inlined_call_operand.hbm [shape: bf16[1024,128], index: 0, kind: input, shape index: {}]   ;;  %s2907_s1 = inlined_call_operand.hbm [shape: bf16[128,128], index: 1, kind: input, shape index: {}]   ;;  %s2908_s2 = inlined_call_operand.vmem [shape: f32[1,128], index: 2, kind: input, shape index: {}]   ;;  %s2909_s3 = inlined_call_operand.hbm [shape: bf16[1024,128], index: 3, kind: output, shape index: {}]  }
   0x1   :  { %10 = vsyncpa [#allocation4 + $0x1], 0 }
   0x2   :  { %11 = vsyncpa [#allocation7], 0 }
   0x3   :  { %12 = vsyncpa [#allocation5], 0 }
   0x4   :  { %14 = vsyncpa [#allocation5 + $0x1], 0  ;;  %s2577_s12 = smov 0   ;;  %s2579_s13 = smov 0  }
   0x5   :  { %s2581_s14 = smov 0   ;;  %s2583_s15 = smov 0  }
   0x6   :  { %s2585_s16 = smov 0   ;;  %s2587_s17 = smov 0  }
   0x7 LB: > { %s1777_s18 = sadd.s32 4294967295, %s2548_s17   ;;  %s1778_s19 = sadd.s32 4294967294, %s2548_s17   ;;  %s2548_s17 = sphi %s2587_s17, %s20_s17   ;;  %s2544_s16 = sphi %s2585_s16, %s2931_s16   ;;  %s2540_s15 = sphi %s2583_s15, %s2930_s15   ;;  %s2536_s14 = sphi %s2581_s14, %s2929_s14   ;;  %s2532_s13 = sphi %s2579_s13, %s2928_s13   ;;  %s2528_s12 = sphi %s2577_s12, %s2927_s12  }
   0x8   : > { %p61_p0 = scmp.ne.s32.totalorder %s2532_s13, %s2528_s12  ;;  %p2611_p1 = scmp.eq.s32.totalorder %s1777_s18, 0 }
   0x9   : > { %p2615_p2 = scmp.eq.s32.totalorder %s1777_s18, 1  ;;  %p147_p3 = scmp.eq.s32.totalorder %s1778_s19, 1 }
   0xa   : > { %p2621_p4 = por %p2611_p1, %p61_p0  ;;  %p1779_p5 = scmp.ge.s32.totalorder %s2548_s17, 1 }
   0xb   : > { %p2626_p6 = por %p147_p3, %p61_p0  ;;  %p154_p7 = scmp.lt.s32.totalorder %s2548_s17, 3 }
   0xc   : > { %s2915_s22 = scalar_select %p2621_p4, 1, 0 }
   0xd   : > { %s2916_s23 = scalar_select %p2626_p6, 1, 0 }
   0xe   : > { %p2631_p8 = pnand %p1779_p5, %p154_p7  ;;  %s2550_s25 = smov [#allocation6]  }
   0xf   : > { %s170_s26 = sshll.u32 %s2550_s25, 4  ;;  %s39_s28 = sadd.s32 1, %s2544_s16  ;;  %s171_s26 = int_to_ptr.vmem [resolvable:$true] %s170_s26 }
  0x10   : > { %p2301_p9 = pneg %p2631_p8  ;;  %s2421_s29 = scalar_lea.vmem %s171_s26, 1024 }
  0x11   : > { %p2422_p13 = scmp.ne.s32.totalorder %s171_s26, %s2421_s29  ;;  %p2429_p5 = scmp.lt.s32.totalorder %s171_s26, %s171_s26 }
  0x12   : > { %p2640_p11 = pnand %p2301_p9, %p2611_p1  ;;  %p2430_p7 = scmp.lt.s32.totalorder %s2421_s29, %s2421_s29 }
  0x14   : > { %p2412_p12 = pneg %p2640_p11  ;;  %p2431_p6 = por %p2430_p7, %p2429_p5 }
  0x16   : > { %p2424_p0 = pnand %p2422_p13, %p2412_p12 }
  0x18   : > { %p2425_p3 = pneg %p2424_p0 }
  0x1a   : > { %p2432_p4 = pnand %p2431_p6, %p2425_p3 }
  0x1c   : > { %2435 = shalt.err (!%p2432_p4)
}
  0x1d   : > { %s2911_s30 = smov 64   ;;  %s2912_s4 = smov 4  }
  0x1e   : > { %2304 = dma.hbm_to_vmem [thread:$0]  (!%p2640_p11), %s2907_s1, 1024, %s171_s26, [#allocation7], %s2911_s30, %s2911_s30, %s2912_s4  }
  0x1f   : > { %p41_p4 = scmp.ge.s32.totalorder %s39_s28, 2  ;;  %s48_s7 = sadd.s32 1, %s2536_s14 }
  0x20   : > { %p55_p6 = scmp.ne.s32.totalorder %s2536_s14, %s2532_s13  ;;  %p56_p9 = scmp.eq.s32.totalorder %s2548_s17, 0 }
  0x21   : > { %s2933_s28 = smov (%p41_p4, %s39_s28), 0  ;;  %p2314_p0 = scmp.lt.s32.totalorder %s2548_s17, 2 }
  0x22   : > { %p2661_p12 = por %p56_p9, %p55_p6  ;;  %p2667_p13 = por %p2615_p2, %p55_p6 }
  0x23   : > { %s43_s10 = ssub.s32 %s2544_s16, %s2933_s28  ;;  %s190_s11 = sand.u32 1, %s2536_s14  }
  0x24   : > { %p46_p11 = scmp.eq.s32.totalorder %s43_s10, 0  ;;  %s1783_s18 = sshll.u32 %s190_s11, 8 }
  0x25   : > { %s1900_s25 = sshll.u32 %s2544_s16, 12  ;;  %s194_s5 = scalar_lea.vmem [#allocation3], %s1783_s18 }
  0x26   : > { %s2676_s19 = scalar_select %p46_p11, %s2536_s14, %s48_s7  }
  0x27   : > { %s201_s29 = scalar_lea.hbm %s2906_s0, %s1900_s25  ;;  %s202_s6 = sshll.u32 %s194_s5, 4  ;;  %s203_s6 = int_to_ptr.vmem [resolvable:$true] %s202_s6 }
  0x28   : > { %p2684_p2 = pnand %p2314_p0, %p2661_p12  ;;  %s191_s30 = scalar_lea.sflag [#allocation4], %s190_s11 }
  0x29   : > { %s2449_s10 = scalar_lea.vmem %s203_s6, 4096  ;;  %s2553_s7 = smov [#allocation3]  }
  0x2a   : > { %p2438_p3 = pneg %p2684_p2  ;;  %p2450_p5 = scmp.ne.s32.totalorder %s203_s6, %s2449_s10 }
  0x2b   : > { %s2454_s4 = sshll.u32 %s2553_s7, 4  ;;  %s2455_s4 = int_to_ptr.vmem [resolvable:$false] %s2454_s4 }
  0x2c   : > { %p2452_p7 = pnand %p2450_p5, %p2438_p3  ;;  %s2456_s25 = scalar_lea.vmem %s2455_s4, 8192 }
  0x2d   : > { %p2457_p6 = scmp.lt.s32.totalorder %s203_s6, %s2455_s4  ;;  %p2458_p9 = scmp.lt.s32.totalorder %s2456_s25, %s2449_s10 }
  0x2e   : > { %p2453_p4 = pneg %p2452_p7 }
  0x2f   : > { %p2459_p11 = por %p2458_p9, %p2457_p6 }
  0x31   : > { %p2460_p10 = pnand %p2459_p11, %p2453_p4 }
  0x33   : > { %2463 = shalt.err (!%p2460_p10)
}
  0x34   : > { %s2922_s8 = smov 4   ;;  %s2923_s18 = smov 64  }
  0x35   : > { %2308 = dma.hbm_to_vmem [thread:$0]  (!%p2684_p2), %s201_s29, 4096, %s203_s6, %s191_s30, %s2923_s18, %s2923_s18, %s2922_s8  }
  0x36   : > { %214 = sbr.rel (%p2631_p8) target bundleno = 370 (0x172), region = 32  ;;  %s2698_s11 = sand.u32 (!%p2631_p8), 1, %s2532_s13  }
  0x37   : > { %s1787_s4 = sshll.u32 (!%p2631_p8), %s2698_s11, 8  ;;  %s217_s26 = scalar_lea.sflag (!%p2631_p8), [#allocation4], %s2698_s11 }
  0x38   : > { %s2704_s27 = scalar_lea.vmem (!%p2631_p8), [#allocation3], %s1787_s4  ;;  %p2924_p10 = scmp.ne.s32.totalorder (!%p2631_p8), %s2915_s22, 0 }
  0x3b   : > { %2515 = dma.done.wait (%p2924_p10), %s217_s26, 4096  }
  0x3c   : > { %2517 = vsyncadd (%p2924_p10), %s217_s26, 4294963200 }
  0x3d   : > { %2519 = dma.done.wait (%p2611_p1), [#allocation7], 1024  }
  0x3e   : > { %2521 = vsyncadd (%p2611_p1), [#allocation7], 4294966272  ;;  %v2370_v0 = vld [vmem:[#allocation6 + $0x38] sm:$0xff]   ;;  %v2371_v1 = vld [vmem:[#allocation6 + $0x30] sm:$0xff]   ;;  %s2763_s24 = scalar_lea.vmem [#allocation8], %s1787_s4  ;;  %s1965_s30 = sshll.u32 %s2540_s15, 12 }
  0x3f   : > { %2197 = vmatprep.subr.bf16.mxu0 %v2370_v0  ;;  %2277 = vmatprep.subr.bf16.mxu1 %v2370_v0  ;;  %v2372_v2 = vld [vmem:[#allocation6 + $0x28] sm:$0xff]   ;;  %v2373_v3 = vld [vmem:[#allocation6 + $0x20] sm:$0xff]   ;;  %v2374_v6 = vld [vmem:[#allocation6 + $0x18] sm:$0xff]   ;;  %s1663_s29 = sshll.u32 %s2763_s24, 4  ;;  %s2852_s21 = scalar_lea.hbm %s2909_s3, %s1965_s30  ;;  %s2854_s29 = int_to_ptr.vmem [resolvable:$true] %s1663_s29 }
  0x40   : > { %2198 = vmatpush3.bf16.msra.mxu0 %v2370_v0  ;;  %2285 = vmatpush3.bf16.msra.mxu1 %v2370_v0  ;;  %v2378_v4 = vld [vmem:[%s2704_s27] sm:$0xff]   ;;  %v2375_v7 = vld [vmem:[#allocation6 + $0x10] sm:$0xff]   ;;  %v2376_v8 = vld [vmem:[#allocation6 + $0x8] sm:$0xff]   ;;  %s1649_s15 = scalar_lea.sflag [#allocation5], %s2698_s11  ;;  %s2464_s10 = scalar_lea.vmem %s2854_s29, 4096 }
  0x41   : > { %2199 = vmatprep.subr.bf16.mxu0 %v2371_v1  ;;  %2278 = vmatprep.subr.bf16.mxu1 %v2371_v1  ;;  %v2379_v5 = vld [vmem:[%s2704_s27 + $0x80] sm:$0xff]   ;;  %v2380_v10 = vld [vmem:[%s2704_s27 + $0x8] sm:$0xff]   ;;  %v2382_v12 = vld [vmem:[%s2704_s27 + $0x10] sm:$0xff]   ;;  %p2465_p1 = scmp.ne.s32.totalorder %s2854_s29, %s2464_s10  ;;  %s2554_s7 = smov [#allocation8]  }
  0x42   : > { %2213 = vmatprep.mubr.bf16.mxu0 %v2378_v4  ;;  %2245 = vmatprep.mubr.bf16.mxu1 %v2379_v5  ;;  %v2377_v9 = vld [vmem:[#allocation6] sm:$0xff]   ;;  %v2381_v11 = vld [vmem:[%s2704_s27 + $0x88] sm:$0xff]   ;;  %v2383_v13 = vld [vmem:[%s2704_s27 + $0x90] sm:$0xff]   ;;  %s2468_s25 = sshll.u32 %s2554_s7, 4  ;;  %s2469_s25 = int_to_ptr.vmem [resolvable:$false] %s2468_s25 }
  0x43   : > { %v2384_v14 = vld [vmem:[%s2704_s27 + $0x18] sm:$0xff]   ;;  %v2386_v16 = vld [vmem:[%s2704_s27 + $0x20] sm:$0xff]   ;;  %v2388_v18 = vld [vmem:[%s2704_s27 + $0x28] sm:$0xff]   ;;  %p2466_p8 = pnand %p2465_p1, %p2667_p13  ;;  %s2470_s8 = scalar_lea.vmem %s2469_s25, 8192 }
  0x44   : > { %2200 = vmatpush3.bf16.msra.mxu0 %v2371_v1  ;;  %2286 = vmatpush3.bf16.msra.mxu1 %v2371_v1  ;;  %v2385_v15 = vld [vmem:[%s2704_s27 + $0x98] sm:$0xff]   ;;  %v2387_v17 = vld [vmem:[%s2704_s27 + $0xa0] sm:$0xff]   ;;  %v2389_v19 = vld [vmem:[%s2704_s27 + $0xa8] sm:$0xff]   ;;  %p2471_p0 = scmp.lt.s32.totalorder %s2854_s29, %s2469_s25  ;;  %p2472_p2 = scmp.lt.s32.totalorder %s2470_s8, %s2464_s10 }
  0x45   : > { %2201 = vmatprep.subr.bf16.mxu0 %v2372_v2  ;;  %2279 = vmatprep.subr.bf16.mxu1 %v2372_v2  ;;  %v2390_v20 = vld [vmem:[%s2704_s27 + $0x30] sm:$0xff]   ;;  %v2392_v22 = vld [vmem:[%s2704_s27 + $0x38] sm:$0xff]   ;;  %v2394_v24 = vld [vmem:[%s2704_s27 + $0x40] sm:$0xff]   ;;  %p2467_p12 = pneg %p2466_p8 }
  0x46   : > { %v2391_v21 = vld [vmem:[%s2704_s27 + $0xb0] sm:$0xff]   ;;  %v2393_v23 = vld [vmem:[%s2704_s27 + $0xb8] sm:$0xff]   ;;  %v2395_v25 = vld [vmem:[%s2704_s27 + $0xc0] sm:$0xff]   ;;  %p2473_p3 = por %p2472_p2, %p2471_p0 }
  0x47   : > { %v2396_v26 = vld [vmem:[%s2704_s27 + $0x48] sm:$0xff]   ;;  %v2398_v28 = vld [vmem:[%s2704_s27 + $0x50] sm:$0xff]   ;;  %v2400_v30 = vld [vmem:[%s2704_s27 + $0x58] sm:$0xff]  }
  0x48   : > { %2202 = vmatpush3.bf16.msra.mxu0 %v2372_v2  ;;  %2287 = vmatpush3.bf16.msra.mxu1 %v2372_v2  ;;  %v2397_v27 = vld [vmem:[%s2704_s27 + $0xc8] sm:$0xff]   ;;  %v2399_v29 = vld [vmem:[%s2704_s27 + $0xd0] sm:$0xff]   ;;  %v2401_v31 = vld [vmem:[%s2704_s27 + $0xd8] sm:$0xff]   ;;  %p2474_p5 = pnand %p2473_p3, %p2467_p12 }
  0x49   : > { %2203 = vmatprep.subr.bf16.mxu0 %v2373_v3  ;;  %2280 = vmatprep.subr.bf16.mxu1 %v2373_v3  ;;  %v2402_v32 = vld [vmem:[%s2704_s27 + $0x60] sm:$0xff]   ;;  %v2404_v34 = vld [vmem:[%s2704_s27 + $0x68] sm:$0xff]   ;;  %v2406_v36 = vld [vmem:[%s2704_s27 + $0x70] sm:$0xff]  }
  0x4a   : > { %v2403_v33 = vld [vmem:[%s2704_s27 + $0xe0] sm:$0xff]   ;;  %v2405_v35 = vld [vmem:[%s2704_s27 + $0xe8] sm:$0xff]   ;;  %v2407_v37 = vld [vmem:[%s2704_s27 + $0xf0] sm:$0xff]  }
  0x4b   : > { %v2408_v38 = vld [vmem:[%s2704_s27 + $0x78] sm:$0xff]   ;;  %v2749_v40 = vld [vmem:[%s2908_s2] ss:$0 sm:$0xff] }
  0x4c   : > { %2204 = vmatpush3.bf16.msra.mxu0 %v2373_v3  ;;  %2288 = vmatpush3.bf16.msra.mxu1 %v2373_v3  ;;  %v2409_v39 = vld [vmem:[%s2704_s27 + $0xf8] sm:$0xff]  }
  0x4d   : > { %2205 = vmatprep.subr.bf16.mxu0 %v2374_v6  ;;  %2281 = vmatprep.subr.bf16.mxu1 %v2374_v6 }
  0x50   : > { %2206 = vmatpush3.bf16.msra.mxu0 %v2374_v6  ;;  %2289 = vmatpush3.bf16.msra.mxu1 %v2374_v6 }
  0x51   : > { %2207 = vmatprep.subr.bf16.mxu0 %v2375_v7  ;;  %2282 = vmatprep.subr.bf16.mxu1 %v2375_v7 }
  0x54   : > { %2208 = vmatpush3.bf16.msra.mxu0 %v2375_v7  ;;  %2290 = vmatpush3.bf16.msra.mxu1 %v2375_v7 }
  0x55   : > { %2209 = vmatprep.subr.bf16.mxu0 %v2376_v8  ;;  %2283 = vmatprep.subr.bf16.mxu1 %v2376_v8 }
  0x58   : > { %2210 = vmatpush3.bf16.msra.mxu0 %v2376_v8  ;;  %2291 = vmatpush3.bf16.msra.mxu1 %v2376_v8 }
  0x59   : > { %2211 = vmatprep.subr.bf16.mxu0 %v2377_v9  ;;  %2284 = vmatprep.subr.bf16.mxu1 %v2377_v9 }
  0x5c   : > { %2212 = vmatpush3.bf16.msra.mxu0 %v2377_v9  ;;  %2292 = vmatpush3.bf16.msra.mxu1 %v2377_v9 }
  0x5f   : > { %2214 = vmatmul.mubr.bf16.vlgmr.msra.gmra.mxu0 %v2380_v10  ;;  %2246 = vmatmul.mubr.bf16.vlgmr.msra.gmra.mxu1 %v2381_v11 }
  0x60   : > { %2217 = vmatprep.mubr.bf16.mxu0 %v2382_v12  ;;  %2249 = vmatprep.mubr.bf16.mxu1 %v2383_v13 }
  0x67   : > { %2218 = vmatmul.mubr.bf16.gmra.mxu0 %v2384_v14  ;;  %2250 = vmatmul.mubr.bf16.gmra.mxu1 %v2385_v15 }
  0x68   : > { %2221 = vmatprep.mubr.bf16.mxu0 %v2386_v16  ;;  %2253 = vmatprep.mubr.bf16.mxu1 %v2387_v17 }
  0x6f   : > { %2222 = vmatmul.mubr.bf16.gmra.mxu0 %v2388_v18  ;;  %2254 = vmatmul.mubr.bf16.gmra.mxu1 %v2389_v19 }
  0x70   : > { %2225 = vmatprep.mubr.bf16.mxu0 %v2390_v20  ;;  %2257 = vmatprep.mubr.bf16.mxu1 %v2391_v21 }
  0x77   : > { %2226 = vmatmul.mubr.bf16.gmra.mxu0 %v2392_v22  ;;  %2258 = vmatmul.mubr.bf16.gmra.mxu1 %v2393_v23 }
  0x78   : > { %2229 = vmatprep.mubr.bf16.mxu0 %v2394_v24  ;;  %2261 = vmatprep.mubr.bf16.mxu1 %v2395_v25 }
  0x7f   : > { %2230 = vmatmul.mubr.bf16.gmra.mxu0 %v2396_v26  ;;  %2262 = vmatmul.mubr.bf16.gmra.mxu1 %v2397_v27 }
  0x80   : > { %2233 = vmatprep.mubr.bf16.mxu0 %v2398_v28  ;;  %2265 = vmatprep.mubr.bf16.mxu1 %v2399_v29 }
  0x87   : > { %2234 = vmatmul.mubr.bf16.gmra.mxu0 %v2400_v30  ;;  %2266 = vmatmul.mubr.bf16.gmra.mxu1 %v2401_v31 }
  0x88   : > { %2237 = vmatprep.mubr.bf16.mxu0 %v2402_v32  ;;  %2269 = vmatprep.mubr.bf16.mxu1 %v2403_v33 }
  0x8f   : > { %2238 = vmatmul.mubr.bf16.gmra.mxu0 %v2404_v34  ;;  %2270 = vmatmul.mubr.bf16.gmra.mxu1 %v2405_v35 }
  0x90   : > { %2241 = vmatprep.mubr.bf16.mxu0 %v2406_v36  ;;  %2273 = vmatprep.mubr.bf16.mxu1 %v2407_v37 }
  0x97   : > { %2242 = vmatmul.mubr.bf16.gmra.mxu0 %v2408_v38  ;;  %2274 = vmatmul.mubr.bf16.gmra.mxu1 %v2409_v39 }
 0x11f   : > { %v2215_v41 = vpop.f32.mrf.mxu0  ;;  %v2247_v42 = vpop.f32.mrf.mxu1 }
 0x120   : > { %v1202_v43 = vadd.f32 %v2215_v41, %v2749_v40  ;;  %v1234_v44 = vadd.f32 %v2247_v42, %v2749_v40 }
 0x121   : > { %v743_v45 = vpop.f32.mrf.mxu0  ;;  %v871_v46 = vpop.f32.mrf.mxu1 }
 0x122   : > { %v1200_v47 = vadd.f32 %v2749_v40, %v743_v45  ;;  %v1232_v48 = vadd.f32 %v2749_v40, %v871_v46  ;;  %v1266_v53 = vmax.f32 %v1202_v43, 0.0  ;;  %v1298_v54 = vmax.f32 %v1234_v44, 0.0 }
 0x123   : > { %v2216_v49 = vpop.f32.mrf.mxu0  ;;  %v2248_v50 = vpop.f32.mrf.mxu1 }
 0x124   : > { %v1203_v51 = vadd.f32 %v2216_v49, %v2749_v40  ;;  %v1235_v52 = vadd.f32 %v2248_v50, %v2749_v40  ;;  %v1264_v61 = vmax.f32 %v1200_v47, 0.0  ;;  %v1296_v62 = vmax.f32 %v1232_v48, 0.0 }
 0x125   : > { %v746_v55 = vpop.f32.mrf.mxu0  ;;  %v874_v56 = vpop.f32.mrf.mxu1 }
 0x126   : > { %v1267_v57 = vmax.f32 %v1203_v51, 0.0  ;;  %v1299_v58 = vmax.f32 %v1235_v52, 0.0  ;;  %v1201_v59 = vadd.f32 %v2749_v40, %v746_v55  ;;  %v1233_v60 = vadd.f32 %v2749_v40, %v874_v56 }
 0x127   : > { %v2219_v63 = vpop.f32.mrf.mxu0  ;;  %v2251_v0 = vpop.f32.mrf.mxu1 }
 0x128   : > { %v1974_v1 = vpack.c.bf16 %v1267_v57, %v1266_v53  ;;  %v2054_v2 = vpack.c.bf16 %v1299_v58, %v1298_v54  ;;  %v1265_v3 = vmax.f32 %v1201_v59, 0.0  ;;  %v1297_v4 = vmax.f32 %v1233_v60, 0.0 }
 0x129   : > { %v1206_v5 = vadd.f32 %v2219_v63, %v2749_v40  ;;  %v1238_v6 = vadd.f32 %v2251_v0, %v2749_v40  ;;  %v759_v7 = vpop.f32.mrf.mxu0  ;;  %v887_v8 = vpop.f32.mrf.mxu1 }
 0x12a   : > { %2126 = vst [vmem:[%s2763_s24 + $0x8] sm:$0xff] %v1974_v1   ;;  %2142 = vst [vmem:[%s2763_s24 + $0x88] sm:$0xff] %v2054_v2   ;;  %v1969_v9 = vpack.c.bf16 %v1265_v3, %v1264_v61  ;;  %v2049_v10 = vpack.c.bf16 %v1297_v4, %v1296_v62  ;;  %v1204_v11 = vadd.f32 %v2749_v40, %v759_v7 }
 0x12b   : > { %v1236_v12 = vadd.f32 %v2749_v40, %v887_v8  ;;  %v2220_v13 = vpop.f32.mrf.mxu0  ;;  %v2252_v14 = vpop.f32.mrf.mxu1  ;;  %v1270_v17 = vmax.f32 %v1206_v5, 0.0  ;;  %v1302_v18 = vmax.f32 %v1238_v6, 0.0 }
 0x12c   : > { %1970 = vst [vmem:[%s2763_s24] sm:$0xff] %v1969_v9   ;;  %2141 = vst [vmem:[%s2763_s24 + $0x80] sm:$0xff] %v2049_v10   ;;  %v1207_v15 = vadd.f32 %v2220_v13, %v2749_v40  ;;  %v1239_v16 = vadd.f32 %v2252_v14, %v2749_v40  ;;  %v1268_v25 = vmax.f32 %v1204_v11, 0.0 }
 0x12d   : > { %v762_v19 = vpop.f32.mrf.mxu0  ;;  %v890_v20 = vpop.f32.mrf.mxu1  ;;  %v1300_v26 = vmax.f32 %v1236_v12, 0.0 }
 0x12e   : > { %v1271_v21 = vmax.f32 %v1207_v15, 0.0  ;;  %v1303_v22 = vmax.f32 %v1239_v16, 0.0  ;;  %v1205_v23 = vadd.f32 %v2749_v40, %v762_v19  ;;  %v1237_v24 = vadd.f32 %v2749_v40, %v890_v20 }
 0x12f   : > { %v2223_v27 = vpop.f32.mrf.mxu0  ;;  %v2255_v28 = vpop.f32.mrf.mxu1 }
 0x130   : > { %v1984_v29 = vpack.c.bf16 %v1271_v21, %v1270_v17  ;;  %v2064_v30 = vpack.c.bf16 %v1303_v22, %v1302_v18  ;;  %v1269_v31 = vmax.f32 %v1205_v23, 0.0  ;;  %v1301_v32 = vmax.f32 %v1237_v24, 0.0 }
 0x131   : > { %v1210_v33 = vadd.f32 %v2223_v27, %v2749_v40  ;;  %v1242_v34 = vadd.f32 %v2255_v28, %v2749_v40  ;;  %v775_v35 = vpop.f32.mrf.mxu0  ;;  %v903_v36 = vpop.f32.mrf.mxu1 }
 0x132   : > { %2128 = vst [vmem:[%s2763_s24 + $0x18] sm:$0xff] %v1984_v29   ;;  %2144 = vst [vmem:[%s2763_s24 + $0x98] sm:$0xff] %v2064_v30   ;;  %v1979_v37 = vpack.c.bf16 %v1269_v31, %v1268_v25  ;;  %v2059_v38 = vpack.c.bf16 %v1301_v32, %v1300_v26  ;;  %v1208_v39 = vadd.f32 %v2749_v40, %v775_v35 }
 0x133   : > { %v1240_v41 = vadd.f32 %v2749_v40, %v903_v36  ;;  %v2224_v42 = vpop.f32.mrf.mxu0  ;;  %v2256_v43 = vpop.f32.mrf.mxu1  ;;  %v1274_v46 = vmax.f32 %v1210_v33, 0.0  ;;  %v1306_v47 = vmax.f32 %v1242_v34, 0.0 }
 0x134   : > { %2127 = vst [vmem:[%s2763_s24 + $0x10] sm:$0xff] %v1979_v37   ;;  %2143 = vst [vmem:[%s2763_s24 + $0x90] sm:$0xff] %v2059_v38   ;;  %v1211_v44 = vadd.f32 %v2224_v42, %v2749_v40  ;;  %v1243_v45 = vadd.f32 %v2256_v43, %v2749_v40  ;;  %v1272_v54 = vmax.f32 %v1208_v39, 0.0 }
 0x135   : > { %v778_v48 = vpop.f32.mrf.mxu0  ;;  %v906_v49 = vpop.f32.mrf.mxu1  ;;  %v1304_v55 = vmax.f32 %v1240_v41, 0.0 }
 0x136   : > { %v1275_v50 = vmax.f32 %v1211_v44, 0.0  ;;  %v1307_v51 = vmax.f32 %v1243_v45, 0.0  ;;  %v1209_v52 = vadd.f32 %v2749_v40, %v778_v48  ;;  %v1241_v53 = vadd.f32 %v2749_v40, %v906_v49 }
 0x137   : > { %v2227_v56 = vpop.f32.mrf.mxu0  ;;  %v2259_v57 = vpop.f32.mrf.mxu1 }
 0x138   : > { %v1994_v58 = vpack.c.bf16 %v1275_v50, %v1274_v46  ;;  %v2074_v59 = vpack.c.bf16 %v1307_v51, %v1306_v47  ;;  %v1273_v60 = vmax.f32 %v1209_v52, 0.0  ;;  %v1305_v61 = vmax.f32 %v1241_v53, 0.0 }
 0x139   : > { %v1214_v62 = vadd.f32 %v2227_v56, %v2749_v40  ;;  %v1246_v63 = vadd.f32 %v2259_v57, %v2749_v40  ;;  %v791_v0 = vpop.f32.mrf.mxu0  ;;  %v919_v1 = vpop.f32.mrf.mxu1 }
 0x13a   : > { %2130 = vst [vmem:[%s2763_s24 + $0x28] sm:$0xff] %v1994_v58   ;;  %2146 = vst [vmem:[%s2763_s24 + $0xa8] sm:$0xff] %v2074_v59   ;;  %v1989_v2 = vpack.c.bf16 %v1273_v60, %v1272_v54  ;;  %v2069_v3 = vpack.c.bf16 %v1305_v61, %v1304_v55  ;;  %v1212_v4 = vadd.f32 %v2749_v40, %v791_v0 }
 0x13b   : > { %v1244_v5 = vadd.f32 %v2749_v40, %v919_v1  ;;  %v2228_v6 = vpop.f32.mrf.mxu0  ;;  %v2260_v7 = vpop.f32.mrf.mxu1  ;;  %v1278_v10 = vmax.f32 %v1214_v62, 0.0  ;;  %v1310_v11 = vmax.f32 %v1246_v63, 0.0 }
 0x13c   : > { %2129 = vst [vmem:[%s2763_s24 + $0x20] sm:$0xff] %v1989_v2   ;;  %2145 = vst [vmem:[%s2763_s24 + $0xa0] sm:$0xff] %v2069_v3   ;;  %v1215_v8 = vadd.f32 %v2228_v6, %v2749_v40  ;;  %v1247_v9 = vadd.f32 %v2260_v7, %v2749_v40  ;;  %v1276_v18 = vmax.f32 %v1212_v4, 0.0 }
 0x13d   : > { %v794_v12 = vpop.f32.mrf.mxu0  ;;  %v922_v13 = vpop.f32.mrf.mxu1  ;;  %v1308_v19 = vmax.f32 %v1244_v5, 0.0 }
 0x13e   : > { %v1279_v14 = vmax.f32 %v1215_v8, 0.0  ;;  %v1311_v15 = vmax.f32 %v1247_v9, 0.0  ;;  %v1213_v16 = vadd.f32 %v2749_v40, %v794_v12  ;;  %v1245_v17 = vadd.f32 %v2749_v40, %v922_v13 }
 0x13f   : > { %v2231_v20 = vpop.f32.mrf.mxu0  ;;  %v2263_v21 = vpop.f32.mrf.mxu1 }
 0x140   : > { %v2004_v22 = vpack.c.bf16 %v1279_v14, %v1278_v10  ;;  %v2084_v23 = vpack.c.bf16 %v1311_v15, %v1310_v11  ;;  %v1277_v24 = vmax.f32 %v1213_v16, 0.0  ;;  %v1309_v25 = vmax.f32 %v1245_v17, 0.0 }
 0x141   : > { %v1218_v26 = vadd.f32 %v2231_v20, %v2749_v40  ;;  %v1250_v27 = vadd.f32 %v2263_v21, %v2749_v40  ;;  %v807_v28 = vpop.f32.mrf.mxu0  ;;  %v935_v29 = vpop.f32.mrf.mxu1 }
 0x142   : > { %2132 = vst [vmem:[%s2763_s24 + $0x38] sm:$0xff] %v2004_v22   ;;  %2148 = vst [vmem:[%s2763_s24 + $0xb8] sm:$0xff] %v2084_v23   ;;  %v1999_v30 = vpack.c.bf16 %v1277_v24, %v1276_v18  ;;  %v2079_v31 = vpack.c.bf16 %v1309_v25, %v1308_v19  ;;  %v1216_v32 = vadd.f32 %v2749_v40, %v807_v28 }
 0x143   : > { %v1248_v33 = vadd.f32 %v2749_v40, %v935_v29  ;;  %v2232_v34 = vpop.f32.mrf.mxu0  ;;  %v2264_v35 = vpop.f32.mrf.mxu1  ;;  %v1282_v38 = vmax.f32 %v1218_v26, 0.0  ;;  %v1314_v39 = vmax.f32 %v1250_v27, 0.0 }
 0x144   : > { %2131 = vst [vmem:[%s2763_s24 + $0x30] sm:$0xff] %v1999_v30   ;;  %2147 = vst [vmem:[%s2763_s24 + $0xb0] sm:$0xff] %v2079_v31   ;;  %v1219_v36 = vadd.f32 %v2232_v34, %v2749_v40  ;;  %v1251_v37 = vadd.f32 %v2264_v35, %v2749_v40  ;;  %v1280_v47 = vmax.f32 %v1216_v32, 0.0 }
 0x145   : > { %v810_v41 = vpop.f32.mrf.mxu0  ;;  %v938_v42 = vpop.f32.mrf.mxu1  ;;  %v1312_v48 = vmax.f32 %v1248_v33, 0.0 }
 0x146   : > { %v1283_v43 = vmax.f32 %v1219_v36, 0.0  ;;  %v1315_v44 = vmax.f32 %v1251_v37, 0.0  ;;  %v1217_v45 = vadd.f32 %v2749_v40, %v810_v41  ;;  %v1249_v46 = vadd.f32 %v2749_v40, %v938_v42 }
 0x147   : > { %v2235_v49 = vpop.f32.mrf.mxu0  ;;  %v2267_v50 = vpop.f32.mrf.mxu1 }
 0x148   : > { %v2014_v51 = vpack.c.bf16 %v1283_v43, %v1282_v38  ;;  %v2094_v52 = vpack.c.bf16 %v1315_v44, %v1314_v39  ;;  %v1281_v53 = vmax.f32 %v1217_v45, 0.0  ;;  %v1313_v54 = vmax.f32 %v1249_v46, 0.0 }
 0x149   : > { %v1222_v55 = vadd.f32 %v2235_v49, %v2749_v40  ;;  %v1254_v56 = vadd.f32 %v2267_v50, %v2749_v40  ;;  %v823_v57 = vpop.f32.mrf.mxu0  ;;  %v951_v58 = vpop.f32.mrf.mxu1 }
 0x14a   : > { %2134 = vst [vmem:[%s2763_s24 + $0x48] sm:$0xff] %v2014_v51   ;;  %2150 = vst [vmem:[%s2763_s24 + $0xc8] sm:$0xff] %v2094_v52   ;;  %v2009_v59 = vpack.c.bf16 %v1281_v53, %v1280_v47  ;;  %v2089_v60 = vpack.c.bf16 %v1313_v54, %v1312_v48  ;;  %v1220_v61 = vadd.f32 %v2749_v40, %v823_v57 }
 0x14b   : > { %v1252_v62 = vadd.f32 %v2749_v40, %v951_v58  ;;  %v2236_v63 = vpop.f32.mrf.mxu0  ;;  %v2268_v0 = vpop.f32.mrf.mxu1  ;;  %v1286_v3 = vmax.f32 %v1222_v55, 0.0  ;;  %v1318_v4 = vmax.f32 %v1254_v56, 0.0 }
 0x14c   : > { %2133 = vst [vmem:[%s2763_s24 + $0x40] sm:$0xff] %v2009_v59   ;;  %2149 = vst [vmem:[%s2763_s24 + $0xc0] sm:$0xff] %v2089_v60   ;;  %v1223_v1 = vadd.f32 %v2236_v63, %v2749_v40  ;;  %v1255_v2 = vadd.f32 %v2268_v0, %v2749_v40  ;;  %v1284_v11 = vmax.f32 %v1220_v61, 0.0 }
 0x14d   : > { %v826_v5 = vpop.f32.mrf.mxu0  ;;  %v954_v6 = vpop.f32.mrf.mxu1  ;;  %v1316_v12 = vmax.f32 %v1252_v62, 0.0 }
 0x14e   : > { %v1287_v7 = vmax.f32 %v1223_v1, 0.0  ;;  %v1319_v8 = vmax.f32 %v1255_v2, 0.0  ;;  %v1221_v9 = vadd.f32 %v2749_v40, %v826_v5  ;;  %v1253_v10 = vadd.f32 %v2749_v40, %v954_v6 }
 0x14f   : > { %v2239_v13 = vpop.f32.mrf.mxu0  ;;  %v2271_v14 = vpop.f32.mrf.mxu1 }
 0x150   : > { %v2024_v15 = vpack.c.bf16 %v1287_v7, %v1286_v3  ;;  %v2104_v16 = vpack.c.bf16 %v1319_v8, %v1318_v4  ;;  %v1285_v17 = vmax.f32 %v1221_v9, 0.0  ;;  %v1317_v18 = vmax.f32 %v1253_v10, 0.0 }
 0x151   : > { %v1226_v19 = vadd.f32 %v2239_v13, %v2749_v40  ;;  %v1258_v20 = vadd.f32 %v2271_v14, %v2749_v40  ;;  %v839_v21 = vpop.f32.mrf.mxu0  ;;  %v967_v22 = vpop.f32.mrf.mxu1 }
 0x152   : > { %2136 = vst [vmem:[%s2763_s24 + $0x58] sm:$0xff] %v2024_v15   ;;  %2152 = vst [vmem:[%s2763_s24 + $0xd8] sm:$0xff] %v2104_v16   ;;  %v2019_v23 = vpack.c.bf16 %v1285_v17, %v1284_v11  ;;  %v2099_v24 = vpack.c.bf16 %v1317_v18, %v1316_v12  ;;  %v1224_v25 = vadd.f32 %v2749_v40, %v839_v21 }
 0x153   : > { %v1256_v26 = vadd.f32 %v2749_v40, %v967_v22  ;;  %v2240_v27 = vpop.f32.mrf.mxu0  ;;  %v2272_v28 = vpop.f32.mrf.mxu1  ;;  %v1290_v31 = vmax.f32 %v1226_v19, 0.0  ;;  %v1322_v32 = vmax.f32 %v1258_v20, 0.0 }
 0x154   : > { %2135 = vst [vmem:[%s2763_s24 + $0x50] sm:$0xff] %v2019_v23   ;;  %2151 = vst [vmem:[%s2763_s24 + $0xd0] sm:$0xff] %v2099_v24   ;;  %v1227_v29 = vadd.f32 %v2240_v27, %v2749_v40  ;;  %v1259_v30 = vadd.f32 %v2272_v28, %v2749_v40  ;;  %v1288_v39 = vmax.f32 %v1224_v25, 0.0 }
 0x155   : > { %v842_v33 = vpop.f32.mrf.mxu0  ;;  %v970_v34 = vpop.f32.mrf.mxu1  ;;  %v1320_v41 = vmax.f32 %v1256_v26, 0.0 }
 0x156   : > { %v1291_v35 = vmax.f32 %v1227_v29, 0.0  ;;  %v1323_v36 = vmax.f32 %v1259_v30, 0.0  ;;  %v1225_v37 = vadd.f32 %v2749_v40, %v842_v33  ;;  %v1257_v38 = vadd.f32 %v2749_v40, %v970_v34 }
 0x157   : > { %v2243_v42 = vpop.f32.mrf.mxu0  ;;  %v2275_v43 = vpop.f32.mrf.mxu1 }
 0x158   : > { %v2034_v44 = vpack.c.bf16 %v1291_v35, %v1290_v31  ;;  %v2114_v45 = vpack.c.bf16 %v1323_v36, %v1322_v32  ;;  %v1289_v46 = vmax.f32 %v1225_v37, 0.0  ;;  %v1321_v47 = vmax.f32 %v1257_v38, 0.0 }
 0x159   : > { %v1230_v48 = vadd.f32 %v2243_v42, %v2749_v40  ;;  %v1262_v49 = vadd.f32 %v2275_v43, %v2749_v40  ;;  %v855_v50 = vpop.f32.mrf.mxu0  ;;  %v983_v51 = vpop.f32.mrf.mxu1 }
 0x15a   : > { %2138 = vst [vmem:[%s2763_s24 + $0x68] sm:$0xff] %v2034_v44   ;;  %2154 = vst [vmem:[%s2763_s24 + $0xe8] sm:$0xff] %v2114_v45   ;;  %v2029_v52 = vpack.c.bf16 %v1289_v46, %v1288_v39  ;;  %v2109_v53 = vpack.c.bf16 %v1321_v47, %v1320_v41  ;;  %v1228_v54 = vadd.f32 %v2749_v40, %v855_v50 }
 0x15b   : > { %v1260_v55 = vadd.f32 %v2749_v40, %v983_v51  ;;  %v2244_v56 = vpop.f32.mrf.mxu0  ;;  %v2276_v57 = vpop.f32.mrf.mxu1  ;;  %v1294_v60 = vmax.f32 %v1230_v48, 0.0  ;;  %v1326_v61 = vmax.f32 %v1262_v49, 0.0 }
 0x15c   : > { %2137 = vst [vmem:[%s2763_s24 + $0x60] sm:$0xff] %v2029_v52   ;;  %2153 = vst [vmem:[%s2763_s24 + $0xe0] sm:$0xff] %v2109_v53   ;;  %v1231_v58 = vadd.f32 %v2244_v56, %v2749_v40  ;;  %v1263_v59 = vadd.f32 %v2276_v57, %v2749_v40  ;;  %v1292_v4 = vmax.f32 %v1228_v54, 0.0 }
 0x15d   : > { %v858_v62 = vpop.f32.mrf.mxu0  ;;  %v986_v63 = vpop.f32.mrf.mxu1  ;;  %v1324_v5 = vmax.f32 %v1260_v55, 0.0 }
 0x15e   : > { %v1295_v0 = vmax.f32 %v1231_v58, 0.0  ;;  %v1327_v1 = vmax.f32 %v1263_v59, 0.0  ;;  %v1229_v2 = vadd.f32 %v2749_v40, %v858_v62  ;;  %v1261_v3 = vadd.f32 %v2749_v40, %v986_v63 }
 0x160   : > { %v2044_v6 = vpack.c.bf16 %v1295_v0, %v1294_v60  ;;  %v2124_v7 = vpack.c.bf16 %v1327_v1, %v1326_v61  ;;  %v1293_v8 = vmax.f32 %v1229_v2, 0.0  ;;  %v1325_v9 = vmax.f32 %v1261_v3, 0.0 }
 0x162   : > { %2140 = vst [vmem:[%s2763_s24 + $0x78] sm:$0xff] %v2044_v6   ;;  %2156 = vst [vmem:[%s2763_s24 + $0xf8] sm:$0xff] %v2124_v7   ;;  %v2039_v40 = vpack.c.bf16 %v1293_v8, %v1292_v4  ;;  %v2119_v10 = vpack.c.bf16 %v1325_v9, %v1324_v5 }
 0x164   : > { %2139 = vst [vmem:[%s2763_s24 + $0x70] sm:$0xff] %v2039_v40   ;;  %2155 = vst [vmem:[%s2763_s24 + $0xf0] sm:$0xff] %v2119_v10  }
 0x165   : > { %2477 = shalt.err (!%p2474_p5)
}
 0x166   : > { %s2478_s18 = scalar_lea.hbm %s2852_s21, 4096  ;;  %s2482_s27 = scalar_lea.hbm %s2909_s3, 8192 }
 0x167   : > { %p2479_p7 = scmp.ne.s32.totalorder %s2852_s21, %s2478_s18  ;;  %p2483_p9 = scmp.lt.s32.totalorder %s2852_s21, %s2909_s3 }
 0x168   : > { %p2484_p11 = scmp.lt.s32.totalorder %s2482_s27, %s2478_s18 }
 0x169   : > { %p2480_p4 = pnand %p2479_p7, %p2667_p13 }
 0x16a   : > { %p2485_p10 = por %p2484_p11, %p2483_p9 }
 0x16b   : > { %p2481_p6 = pneg %p2480_p4 }
 0x16d   : > { %p2486_p1 = pnand %p2485_p10, %p2481_p6 }
 0x16f   : > { %2489 = shalt.err (!%p2486_p1)
}
 0x170   : > { %s2555_s24 = smov 64   ;;  %s2556_s30 = smov 4  }
 0x171   : > { %2299 = dma.vmem_to_hbm [thread:$0]  (%p2667_p13), %s2854_s29, 4096, %s2852_s21, %s1649_s15, %s2555_s24, %s2555_s24, %s2556_s30  }
 0x172 PF: > { %s1678_s5 = sand.u32 1, %s2528_s12   ;;  %p2925_p8 = scmp.ne.s32.totalorder %s2916_s23, 0 }
 0x173   : > { %p2926_p12 = scmp.ge.s32.totalorder %s2548_s17, 2  ;;  %s1679_s6 = scalar_lea.sflag [#allocation5], %s1678_s5 }
 0x175   : > { %p2310_p0 = pnand %p2926_p12, %p2925_p8 }
 0x177   : > { %p2311_p2 = pneg %p2310_p0 }
 0x179   : > { %2523 = dma.done.wait (%p2311_p2), %s1679_s6, 4096  }
 0x17a   : > { %2525 = vsyncadd (%p2311_p2), %s1679_s6, 4294963200  ;;  %s20_s17 = sadd.s32 1, %s2548_s17   ;;  %s2927_s12 = smov %s2532_s13 }
 0x17b   : > { %p17_p3 = scmp.ge.s32.totalorder %s20_s17, 4   ;;  %s2928_s13 = smov %s2536_s14 }
 0x17c   : > { %s2929_s14 = smov %s2676_s19  ;;  %s2930_s15 = smov %s2544_s16 }
 0x17d   : > { %s2931_s16 = smov %s2933_s28  ;;  %19 = sbr.rel (!%p17_p3) target bundleno = 7 (0x7), region = 93 }
 0x182   :  { %1684 = vsyncpa [#allocation4], 1 }
 0x183   :  { %1686 = vsyncpa [#allocation4 + $0x1], 1 }
 0x184   :  { %1687 = vsyncpa [#allocation7], 1 }
 0x185   :  { %1688 = vsyncpa [#allocation5], 1 }
 0x186   :  { %1690 = vsyncpa [#allocation5 + $0x1], 1 }

</bundles_post_ra>
